<compile_context>
chip_gen: v7x
topology: tpu7x:2x2x1
jax: 0.10.0
libtpu: 0.0.40
codegen_flags: <defaults>
</compile_context>

<pallas_src>
import functools
import math

import jax
import jax.numpy as jnp
from jax import lax
from jax.experimental import pallas as pl
from jax.experimental.pallas import tpu as pltpu


# ----------------------------------------------------------------------------
# Kernel 1: streaming accumulation of the augmented Gram matrix over the batch.
# ----------------------------------------------------------------------------
def _gram_accum_kernel(ci_ref, cj_ref, gram_ref, *,
                       block_b, nb_per_shard, batch, needs_mask):
    p = pl.program_id(0)          # megacore shard (parallel)
    b = pl.program_id(1)          # batch tile within shard (reduction)

    @pl.when(b == 0)
    def _init():
        gram_ref[...] = jnp.zeros_like(gram_ref)

    ci = ci_ref[...]              # (Bt, K) native dtype (bf16/f32)
    cj = cj_ref[...]              # (Bt, K)
    ones = jnp.ones((ci.shape[0], 1), dtype=ci.dtype)
    # Fused operand: [c_i | c_j | 1]  ->  (Bt, 2K+1).  Lane concat, one vreg-ish
    # op for small K; makes the whole step a single MXU push.
    c = jnp.concatenate([ci, cj, ones], axis=-1)

    if needs_mask:
        # Tail / clamped blocks: zero out rows past the real batch size so they
        # contribute nothing to the Gram (including the ones column).
        start = (p * nb_per_shard + b) * block_b
        rows = lax.broadcasted_iota(jnp.int32, c.shape, 0) + start
        c = jnp.where(rows < batch, c, jnp.zeros_like(c))

    # Contract the batch (sublane) axis of both operands: c^T @ c on the MXU
    # without materialising a transpose; accumulate in f32.
    gram_ref[...] += lax.dot_general(
        c, c, (((0,), (0,)), ((), ())), preferred_element_type=jnp.float32)


# ----------------------------------------------------------------------------
# Kernel 2: tiny finalize -- combine shard Grams and compute the scalar loss.
# ----------------------------------------------------------------------------
def _finalize_kernel(gram_ref, out_ref, *, class_num, temperature, lambd, n_shards):
    K = class_num
    N = 2 * K

    g = gram_ref[0]
    for s in range(1, n_shards):
        g = g + gram_ref[s]                        # (2K+1, 2K+1) f32

    # ---- entropy terms: column sums live in the ones-row of the Gram ----
    colsum = g[N:N + 1, :N]                        # (1, 2K)
    p_i = colsum[:, :K]
    p_j = colsum[:, K:]
    p_i = p_i / jnp.sum(p_i)
    p_j = p_j / jnp.sum(p_j)
    # NOTE: an exactly-zero cluster column gives 0*log(0)=NaN, same as PyTorch.
    ne_i = math.log(K) + jnp.sum(p_i * jnp.log(p_i))
    ne_j = math.log(K) + jnp.sum(p_j * jnp.log(p_j))

    # ---- cosine-similarity matrix of the 2K cluster vectors ----
    gram = g[:N, :N]                               # (N, N)
    row = lax.broadcasted_iota(jnp.int32, (N, N), 0)
    col = lax.broadcasted_iota(jnp.int32, (N, N), 1)
    diag_mask = row == col
    zero = jnp.zeros_like(gram)
    diag = jnp.where(diag_mask, gram, zero)        # squared norms on the diagonal
    norm_row = jnp.sqrt(jnp.sum(diag, axis=1, keepdims=True))   # (N, 1)
    norm_col = jnp.sqrt(jnp.sum(diag, axis=0, keepdims=True))   # (1, N)
    # Exact torch.nn.CosineSimilarity eps semantics: clamp the norm product.
    denom = jnp.maximum(norm_row * norm_col, 1e-8)
    sim = gram / denom * (1.0 / temperature)

    pos_mask = jnp.logical_or(col - row == K, row - col == K)
    neg_mask = jnp.logical_not(jnp.logical_or(diag_mask, pos_mask))
    on_diag = jnp.sum(jnp.where(pos_mask, (sim - 1.0) ** 2, zero))
    off_diag = jnp.sum(jnp.where(neg_mask, sim * sim, zero))

    loss = (on_diag + lambd * off_diag) / float(N * (N - 1))
    out_ref[0, 0] = loss + ne_i + ne_j


# ----------------------------------------------------------------------------
# Wrapper
# ----------------------------------------------------------------------------
def _round_up(x, m):
    return -(-x // m) * m


def _vmem_capacity_bytes():
    try:
        return int(pltpu.get_tpu_info().vmem_capacity_bytes)
    except Exception:
        return 64 * 1024 * 1024          # conservative: v7x per-TensorCore VMEM


def _pick_block_b(B, K, itemsize):
    """Largest batch tile whose *padded* VMEM footprint fits a generation-aware
    budget.  Lane padding is accounted for: a (Bt, K) tile occupies
    Bt x round_up(K,128) elements regardless of K."""
    vmem_cap = _vmem_capacity_bytes()
    kp = _round_up(max(K, 1), 128)                  # padded input lane width
    nap = _round_up(2 * K + 1, 128)                 # padded fused/Gram lane width
    gram_bytes = _round_up(2 * K + 1, 8) * nap * 4  # resident f32 accumulator
    # v7x (64 MiB VMEM) -> ~16 MiB of streamed input; v5e/v6e (128 MiB) -> ~32 MiB.
    budget = min(vmem_cap // 4, 32 * 1024 * 1024)
    budget = max(budget - 2 * gram_bytes, 1 * 1024 * 1024)
    # 2 inputs x 2 pipeline buffers + fused (Bt, 2K+1) temporary (x2 slack for
    # the masked copy / spill).
    per_row = (2 * 2 * kp + 2 * nap) * itemsize
    max_rows = max(8, budget // per_row)
    bb = min(B, int(max_rows), 4096)
    if bb < B:
        bb = max(8, (bb // 8) * 8)                  # keep sublane alignment
    return bb


def barlow_twins_loss(c_i, c_j, *, class_num, temperature, lambd, block_b=None):
    """Pallas TPU forward of BarlowTwinsLoss(class_num, temperature, lambd)."""
    B, K = c_i.shape
    assert K == class_num and c_j.shape == (B, K)
    itemsize = jnp.dtype(c_i.dtype).itemsize
    if block_b is None:
        block_b = _pick_block_b(B, K, itemsize)
    block_b = min(block_b, B)
    if block_b < B and block_b % 8 != 0:
        block_b = max(8, (block_b // 8) * 8)

    NA = 2 * K + 1                                  # augmented Gram size
    nb_total = pl.cdiv(B, block_b)
    n_shards = 2 if nb_total >= 2 else 1            # v7x megacore; harmless on 1-TC chips
    nb_per_shard = pl.cdiv(nb_total, n_shards)
    needs_mask = (n_shards * nb_per_shard * block_b) != B

    if needs_mask:
        def in_map(p, b):
            # Clamp logical tail blocks onto the last real block; the kernel
            # zero-masks the rows that lie past the true batch size.
            return (jnp.minimum(p * nb_per_shard + b, nb_total - 1), 0)
    else:
        def in_map(p, b):
            return (p * nb_per_shard + b, 0)

    vmem_cap = _vmem_capacity_bytes()
    vmem_limit = int(max(32 * 1024 * 1024,
                         min(vmem_cap - 8 * 1024 * 1024, 112 * 1024 * 1024)))

    accum_kernel = functools.partial(
        _gram_accum_kernel, block_b=block_b, nb_per_shard=nb_per_shard,
        batch=B, needs_mask=needs_mask)

    partial_gram = pl.pallas_call(
        accum_kernel,
        out_shape=jax.ShapeDtypeStruct((n_shards, NA, NA), jnp.float32),
        grid_spec=pltpu.PrefetchScalarGridSpec(
            num_scalar_prefetch=0,
            grid=(n_shards, nb_per_shard),
            in_specs=[pl.BlockSpec((block_b, K), in_map),
                      pl.BlockSpec((block_b, K), in_map)],
            out_specs=pl.BlockSpec((None, NA, NA), lambda p, b: (p, 0, 0)),
        ),
        compiler_params=pltpu.CompilerParams(
            dimension_semantics=("parallel", "arbitrary"),
            vmem_limit_bytes=vmem_limit),
    )(c_i, c_j)

    finalize_kernel = functools.partial(
        _finalize_kernel, class_num=K, temperature=float(temperature),
        lambd=float(lambd), n_shards=n_shards)

    out = pl.pallas_call(
        finalize_kernel,
        out_shape=jax.ShapeDtypeStruct((1, 1), jnp.float32),
        grid_spec=pltpu.PrefetchScalarGridSpec(
            num_scalar_prefetch=0,
            grid=(1,),
            in_specs=[pl.BlockSpec((n_shards, NA, NA), lambda i: (0, 0, 0))],
            out_specs=pl.BlockSpec((1, 1), lambda i: (0, 0),
                                   memory_space=pltpu.MemorySpace.SMEM),
        ),
        compiler_params=pltpu.CompilerParams(
            dimension_semantics=("arbitrary",)),
    )(partial_gram)
    return out[0, 0]


def barlow_twins_loss_ref(c_i, c_j, *, class_num, temperature, lambd):
    """Pure-JAX reference mirroring the PyTorch forward, for verification."""
    K = class_num
    N = 2 * K
    p_i = jnp.sum(c_i, axis=0)
    p_i = p_i / jnp.sum(p_i)
    ne_i = math.log(K) + jnp.sum(p_i * jnp.log(p_i))
    p_j = jnp.sum(c_j, axis=0)
    p_j = p_j / jnp.sum(p_j)
    ne_j = math.log(K) + jnp.sum(p_j * jnp.log(p_j))
    ne_loss = ne_i + ne_j

    c = jnp.concatenate([c_i.T, c_j.T], axis=0)
    norms = jnp.sqrt(jnp.sum(c * c, axis=1))
    g = c @ c.T
    sim = g / jnp.maximum(norms[:, None] * norms[None, :], 1e-8) / temperature

    row = jnp.arange(N)[:, None]
    col = jnp.arange(N)[None, :]
    pos_mask = jnp.logical_or(col - row == K, row - col == K)
    neg_mask = jnp.logical_and(row != col, jnp.logical_not(pos_mask))
    on_diag = jnp.sum(jnp.where(pos_mask, (sim - 1.0) ** 2, 0.0))
    off_diag = jnp.sum(jnp.where(neg_mask, sim ** 2, 0.0))
    loss = (on_diag + lambd * off_diag) / (N * (N - 1))
    return loss + ne_loss


if __name__ == "__main__":
    # BarlowTwinsLoss(class_num=8, temperature=0.5, device=<tpu>, lambd=0.005)
    class_num = 8
    temperature = 0.5
    lambd = 0.005

    key = jax.random.PRNGKey(0)
    k1, k2, k3, k4 = jax.random.split(key, 4)

    def make(k, b):
        # cluster-assignment probabilities (softmax outputs), as the module expects
        return jax.nn.softmax(
            jax.random.normal(k, (b, class_num), dtype=jnp.float32), axis=-1)

    c_i = make(k1, 16)
    c_j = make(k2, 16)
    ref = barlow_twins_loss_ref(c_i, c_j, class_num=class_num,
                                temperature=temperature, lambd=lambd)

    # 1) auto tile -> single block, grid (1, 1)
    out1 = jax.block_until_ready(barlow_twins_loss(
        c_i, c_j, class_num=class_num, temperature=temperature, lambd=lambd))
    assert jnp.allclose(out1, ref, rtol=1e-4, atol=1e-5), (out1, ref)

    # 2) two megacore shards (grid (2, 1)) -- exercises the partial-Gram combine
    out2 = jax.block_until_ready(barlow_twins_loss(
        c_i, c_j, class_num=class_num, temperature=temperature, lambd=lambd,
        block_b=8))
    assert jnp.allclose(out2, ref, rtol=1e-4, atol=1e-5), (out2, ref)

    # 3) batch not divisible by the tile: clamped index map + in-kernel row mask
    c_i3 = make(k3, 20)
    c_j3 = make(k4, 20)
    ref3 = barlow_twins_loss_ref(c_i3, c_j3, class_num=class_num,
                                 temperature=temperature, lambd=lambd)
    out3 = jax.block_until_ready(barlow_twins_loss(
        c_i3, c_j3, class_num=class_num, temperature=temperature, lambd=lambd,
        block_b=8))
    assert jnp.allclose(out3, ref3, rtol=1e-4, atol=1e-5), (out3, ref3)

    # 4) native bf16 inputs (no wrapper-side upcast); Gram still accumulates in f32
    c_i4 = c_i.astype(jnp.bfloat16)
    c_j4 = c_j.astype(jnp.bfloat16)
    ref4 = barlow_twins_loss_ref(c_i4.astype(jnp.float32), c_j4.astype(jnp.float32),
                                 class_num=class_num, temperature=temperature,
                                 lambd=lambd)
    out4 = jax.block_until_ready(barlow_twins_loss(
        c_i4, c_j4, class_num=class_num, temperature=temperature, lambd=lambd))
    assert jnp.allclose(out4, ref4, rtol=1e-2, atol=1e-3), (out4, ref4)

    print("KERNEL_OK")
</pallas_src>

<mosaic_0001>
module attributes {stable_mosaic.version = 11 : i64} {
  func.func @_gram_accum_kernel(%arg0: i32, %arg1: i32, %arg2: memref<16x8xf32, #tpu.memory_space<vmem>>, %arg3: memref<16x8xf32, #tpu.memory_space<vmem>>, %arg4: memref<1x17x17xf32, #tpu.memory_space<vmem>>) attributes {dimension_semantics = [#tpu.dimension_semantics<parallel>, #tpu.dimension_semantics<arbitrary>], iteration_bounds = array<i64: 1, 1>, scalar_prefetch = 0 : i64, scratch_operands = 0 : i64, tpu.core_type = #tpu.core_type<tc>, window_params = [{transform_indices = @transform_0, window_bounds = array<i64: 16, 8>}, {transform_indices = @transform_1, window_bounds = array<i64: 16, 8>}, {transform_indices = @transform_2, window_bounds = array<i64: 1, 17, 17>}]} {
    %c0_i32 = arith.constant 0 : i32
    %0 = arith.cmpi eq, %arg1, %c0_i32 : i32
    %1 = arith.extui %0 : i1 to i32
    %c0_i32_0 = arith.constant 0 : i32
    %2 = arith.cmpi ne, %1, %c0_i32_0 : i32
    scf.if %2 {
      %cst_11 = arith.constant 0.000000e+00 : f32
      %14 = vector.broadcast %cst_11 : f32 to vector<17x17xf32>
      %c0_12 = arith.constant 0 : index
      %c0_13 = arith.constant 0 : index
      %c0_14 = arith.constant 0 : index
      %15 = vector.load %arg4[%c0_12, %c0_13, %c0_14] : memref<1x17x17xf32, #tpu.memory_space<vmem>>, vector<1x17x17xf32>
      %16 = vector.shape_cast %15 : vector<1x17x17xf32> to vector<17x17xf32>
      %17 = vector.shape_cast %14 : vector<17x17xf32> to vector<1x17x17xf32>
      tpu.vector_store %arg4[%c0_12, %c0_13, %c0_14], %17 {strides = array<i32>} : memref<1x17x17xf32, #tpu.memory_space<vmem>>, vector<1x17x17xf32>,
    } else {
    }
    %c0 = arith.constant 0 : index
    %c0_1 = arith.constant 0 : index
    %3 = vector.load %arg2[%c0, %c0_1] : memref<16x8xf32, #tpu.memory_space<vmem>>, vector<16x8xf32>
    %c0_2 = arith.constant 0 : index
    %c0_3 = arith.constant 0 : index
    %4 = vector.load %arg3[%c0_2, %c0_3] : memref<16x8xf32, #tpu.memory_space<vmem>>, vector<16x8xf32>
    %cst = arith.constant 1.000000e+00 : f32
    %5 = vector.broadcast %cst : f32 to vector<16x1xf32>
    %6 = tpu.concatenate %3, %4, %5 in 1 : vector<16x8xf32>, vector<16x8xf32>, vector<16x1xf32> -> vector<16x17xf32>
    %c0_4 = arith.constant 0 : index
    %c0_5 = arith.constant 0 : index
    %c0_6 = arith.constant 0 : index
    %7 = vector.load %arg4[%c0_4, %c0_5, %c0_6] : memref<1x17x17xf32, #tpu.memory_space<vmem>>, vector<1x17x17xf32>
    %8 = vector.shape_cast %7 : vector<1x17x17xf32> to vector<17x17xf32>
    %cst_7 = arith.constant dense<0.000000e+00> : vector<17x17xf32>
    %9 = tpu.matmul %6, %6, %cst_7 {dimension_numbers = #tpu.dot_dimension_numbers<[0], [0], [1], [1], [0, 1, 1, 1], [], []>} : vector<16x17xf32>, vector<16x17xf32>, vector<17x17xf32> -> vector<17x17xf32>
    %10 = arith.addf %8, %9 : vector<17x17xf32>
    %c0_8 = arith.constant 0 : index
    %c0_9 = arith.constant 0 : index
    %c0_10 = arith.constant 0 : index
    %11 = vector.load %arg4[%c0_8, %c0_9, %c0_10] : memref<1x17x17xf32, #tpu.memory_space<vmem>>, vector<1x17x17xf32>
    %12 = vector.shape_cast %11 : vector<1x17x17xf32> to vector<17x17xf32>
    %13 = vector.shape_cast %10 : vector<17x17xf32> to vector<1x17x17xf32>
    tpu.vector_store %arg4[%c0_8, %c0_9, %c0_10], %13 {strides = array<i32>} : memref<1x17x17xf32, #tpu.memory_space<vmem>>, vector<1x17x17xf32>,
    return
  }
  func.func @transform_0(%arg0: i32, %arg1: i32) -> (i32, i32) {
    %c1_i32 = arith.constant 1 : i32
    %0 = arith.muli %arg0, %c1_i32 : i32
    %1 = arith.addi %0, %arg1 : i32
    %c0_i32 = arith.constant 0 : i32
    %c0_i32_0 = arith.constant 0 : i32
    return %1, %c0_i32 : i32, i32
  }
  func.func @transform_1(%arg0: i32, %arg1: i32) -> (i32, i32) {
    %c1_i32 = arith.constant 1 : i32
    %0 = arith.muli %arg0, %c1_i32 : i32
    %1 = arith.addi %0, %arg1 : i32
    %c0_i32 = arith.constant 0 : i32
    %c0_i32_0 = arith.constant 0 : i32
    return %1, %c0_i32 : i32, i32
  }
  func.func @transform_2(%arg0: i32, %arg1: i32) -> (i32, i32, i32) {
    %c0_i32 = arith.constant 0 : i32
    %c0_i32_0 = arith.constant 0 : i32
    %c0_i32_1 = arith.constant 0 : i32
    return %arg0, %c0_i32, %c0_i32_0 : i32, i32, i32
  }
}

</mosaic_0001>

<bundles_post_ra>
// kernel: tpu_custom_call.1
= control target key start
LH: loop header
LB: loop body
LE: loop exit
PB: predicated region body
PF: predicated region fallthrough
CT: control target
= control target key end

     0   :  { %v260_v1 = vmov 0.0|0.0   ;;  %s261_s11 = smov 8   ;;  %vm262_vm0 = vmmov 0   ;;  %v263_v2 = vmov 0.0   ;;  %vm76_vm1 = vcmask 64512   ;;  %s332_s1 = inlined_call_operand.vmem [shape: f32[16,8], index: 1, kind: input, shape index: {}]   ;;  %s333_s0 = inlined_call_operand.vmem [shape: f32[16,8], index: 0, kind: input, shape index: {}]   ;;  %s334_s2 = inlined_call_operand.vmem [shape: f32[1,17,17], index: 2, kind: output, shape index: {}]  }
   0x1   :  { %v66_v0 = vld [vmem:[%s332_s1] sm:$0xff]  ;;  %251 = vmatprep.subr.bf16.mxu0 %v260_v1  ;;  %254 = vmatprep.subr.bf16.mxu1 %v260_v1  ;;  %v67_v3 = vld [vmem:[%s332_s1 + $0x8] sm:$0xff]  ;;  %vm79_vm2 = vcmask 130048   ;;  %vm59_vm3 = vcmask 138240   ;;  %vm62_vm4 = vcmask 131072  }
   0x2   :  { %70 = vrot.lane.b32.xlu0 %v66_v0, %s261_s11  ;;  %242 = vmatprep.mubr.msk.f32.mxu0 %vm262_vm0, %v263_v2  ;;  %v64_v4 = vld [vmem:[%s333_s0] sm:$0xff]  ;;  %v65_v8 = vld [vmem:[%s333_s0 + $0x8] sm:$0xff]  ;;  %60 = vst.msk [vmem:[%s334_s2] sm:$0xff] %vm59_vm3, %v263_v2 }
   0x3   :  { %245 = vmatprep.mubr.msk.f32.mxu1 %vm262_vm0, %v263_v2  ;;  %61 = vst.msk [vmem:[%s334_s2 + $0x8] sm:$0xff] %vm59_vm3, %v263_v2 }
   0x4   :  { %63 = vst.msk [vmem:[%s334_s2 + $0x10] sm:$0x1] %vm62_vm4, %v263_v2 }
   0x6   :  { %72 = vrot.lane.b32.xlu0 %v67_v3, %s261_s11 }
   0x9   :  { %v82_v16 = vld [vmem:[%s334_s2] sm:$0xff] }
   0xa   :  { %v83_v20 = vld [vmem:[%s334_s2 + $0x8] sm:$0xff] }
   0xb   :  { %v84_v24 = vld [vmem:[%s334_s2 + $0x10] sm:$0x1] }
  0x74   :  { %v71_v5 = vpop.permute.xlu0 %70 }
  0x75   :  { %v77_v6 = vsel %vm76_vm1, %v64_v4, %v71_v5 }
  0x76   :  { %v80_v7 = vsel %vm79_vm2, %v77_v6, 1.0 }
  0x77   :  { %85 = vxpose.xlu1.b32.start [1/2] (short) (narrow) %v80_v7, 24 }
  0x78   :  { %v73_v9 = vpop.permute.xlu0 %72 }
  0x79   :  { %v78_v10 = vsel %vm76_vm1, %v65_v8, %v73_v9 }
  0x7a   :  { %v81_v11 = vsel %vm79_vm2, %v78_v10, 1.0 }
  0x7b   :  { %86 = vxpose.xlu1.b32.end [2/2] (short) (narrow) %v81_v11, 24  ;;  %v252_v12 = vpack.c.bf16 %v81_v11, %v80_v7 }
  0x7d   :  { %253 = vmatpush3.bf16.msra.mxu0 %v252_v12  ;;  %255 = vmatpush3.bf16.msra.mxu1 %v252_v12 }
  0xf7   :  { %v101_v13 = vpop.trf.xlu1 }
  0xf8   :  { %243 = vmatmul.mubr.msk.f32.vlgmr.msra.gmra.mrb[0].mxu0 %vm79_vm2, %v101_v13 }
  0xfb   :  { %v102_v14 = vpop.trf.xlu1 }
  0xfc   :  { %246 = vmatmul.mubr.msk.f32.vlgmr.msra.gmra.mrb[0].mxu1 %vm79_vm2, %v102_v14 }
  0xfd   :  { %248 = vmatprep.mubr.msk.f32.mxu1 %vm262_vm0, %v263_v2 }
  0xff   :  { %v103_v15 = vpop.trf.xlu1 }
 0x100   :  { %249 = vmatmul.mubr.msk.f32.gmra.mrb[2].mxu1 %vm79_vm2, %v103_v15 }
 0x1cb   :  { %v192_v17 = vpop.f32.mrb[0].mxu0 }
 0x1cc   :  { %v206_v18 = vadd.f32 %v192_v17, %v82_v16  ;;  %v244_v19 = vpop.f32.mrb[1].mxu0 }
 0x1ce   :  { %210 = vst.msk [vmem:[%s334_s2] sm:$0xff] %vm59_vm3, %v206_v18 }
 0x1cf   :  { %v197_v21 = vpop.f32.mrb[0].mxu1 }
 0x1d0   :  { %v207_v22 = vadd.f32 %v197_v21, %v83_v20  ;;  %v247_v23 = vpop.f32.mrb[1].mxu1 }
 0x1d2   :  { %211 = vst.msk [vmem:[%s334_s2 + $0x8] sm:$0xff] %vm59_vm3, %v207_v22 }
 0x1d3   :  { %v202_v25 = vpop.f32.mrb[2].mxu1 }
 0x1d4   :  { %v208_v26 = vadd.f32 %v202_v25, %v84_v24  ;;  %v250_v27 = vpop.f32.mrb[3].mxu1 }
 0x1d6   :  { %213 = vst.msk [vmem:[%s334_s2 + $0x10] sm:$0x1] %vm62_vm4, %v208_v26 }

</bundles_post_ra>
